<compile_context>
chip_gen: v5e
topology: v5e:2x2
jax: 0.10.0
libtpu: 0.0.40
codegen_flags: <defaults>
</compile_context>

<pallas_src>
import functools

import jax
import jax.numpy as jnp
from jax.experimental import pallas as pl
from jax.experimental.pallas import tpu as pltpu


F = 16          # input features of the Linear layer
PACK = 8        # original rows packed per 128-lane vector row (8 * 16 = 128)


def _round_up(n, m):
    return ((n + m - 1) // m) * m


def _synth_kernel(x_ref, w_ref, b_ref, o_ref):
    # x_ref: [tmp, 128]  packed activations (8 original rows per packed row)
    # w_ref: [128, 8]    block-diagonal weight (resident across the grid)
    # b_ref: [1]         bias scalar in SMEM
    # o_ref: [tmp, 8]    o_ref[p, j] = sigmoid(<row 8p+j, w> + b)
    z = jnp.dot(x_ref[...], w_ref[...],
                preferred_element_type=jnp.float32)        # MXU, f32 acc
    o_ref[...] = jax.nn.sigmoid(z + b_ref[0]).astype(o_ref.dtype)


@functools.partial(jax.jit, static_argnames=("block_rows",))
def synthesizer_forward(x, w, b, *, block_rows=65536):
    """x: [B, 16], w: PyTorch-style weight ([1,16] / [16,1] / [16]), b: [1].

    Returns sigmoid(x @ w.T + b) with shape [B, 1] in x.dtype.
    """
    B, feat = x.shape
    assert feat == F, f"expected {F} input features, got {feat}"
    out_dtype = x.dtype

    # Tiny parameters: weight in x.dtype (bf16 inputs -> bf16 MXU path),
    # bias as an f32 scalar in SMEM (post-matmul math stays f32).
    w_flat = jnp.asarray(w).reshape(F).astype(x.dtype)          # [16]
    b_smem = jnp.asarray(b, jnp.float32).reshape(1)             # [1]

    # Block-diagonal weight: w_bd[16*j + f, k] = w_flat[f] * (j == k).
    eye8 = jnp.eye(PACK, dtype=x.dtype)                          # [8, 8]
    w_bd = (eye8[:, None, :] * w_flat[None, :, None]).reshape(PACK * F, PACK)

    # Pad only to a multiple of PACK=8 (<=7 rows).  This is the only case
    # that materializes a copy of x; B % 8 == 0 is fully copy-free.
    b_pad8 = _round_up(B, PACK)
    if b_pad8 != B:
        x = jnp.pad(x, ((0, b_pad8 - B), (0, 0)))
    packed = b_pad8 // PACK

    # Contiguous, copy-free view: [B8, 16] -> [B8/8, 128] (lane-dense reads).
    xp = x.reshape(packed, PACK * F)

    # Tile size in packed rows (sublane dim must be a multiple of 8 unless it
    # equals the full extent).  Default 8192 packed rows = 65536 original rows
    # = 4 MiB f32 input tile (~8.6 MiB double-buffered: fits v5e/v6e/v7x
    # default scoped VMEM).  If everything fits one tile but there are >=2048
    # rows, split in two so the parallel grid can use both TCs on v7x.
    tmp_cap = max(_round_up(max(block_rows, PACK) // PACK, 8), 8)
    if packed <= tmp_cap:
        if packed >= 256:                      # >= 2048 original rows
            tmp = _round_up(pl.cdiv(packed, 2), 8)
        else:
            tmp = packed                       # full extent (always legal)
    else:
        tmp = tmp_cap
    grid = (pl.cdiv(packed, tmp),)             # partial last tile allowed

    out_bytes = packed * PACK * jnp.dtype(out_dtype).itemsize
    cost = pl.CostEstimate(
        flops=2 * b_pad8 * F,
        transcendentals=b_pad8,
        bytes_accessed=xp.size * xp.dtype.itemsize + w_bd.size * w_bd.dtype.itemsize + out_bytes,
    )

    out2d = pl.pallas_call(
        _synth_kernel,
        out_shape=jax.ShapeDtypeStruct((packed, PACK), out_dtype),
        grid_spec=pltpu.PrefetchScalarGridSpec(
            num_scalar_prefetch=0,
            grid=grid,
            in_specs=[
                # Packed activations: one tile per grid step (pipelined).
                pl.BlockSpec((tmp, PACK * F), lambda i: (i, 0)),
                # Block-diagonal weight: resident across the whole grid.
                pl.BlockSpec((PACK * F, PACK), lambda i: (0, 0)),
                # Bias scalar in SMEM.
                pl.BlockSpec(memory_space=pltpu.MemorySpace.SMEM),
            ],
            out_specs=pl.BlockSpec((tmp, PACK), lambda i: (i, 0)),
        ),
        compiler_params=pltpu.CompilerParams(
            dimension_semantics=("parallel",),  # independent batch tiles
        ),
        cost_estimate=cost,
    )(xp, w_bd, b_smem)

    # out2d[p, j] = result for original row 8*p + j -> contiguous reshape to
    # [B8, 1] (free), then drop the <=7 padded rows.
    return out2d.reshape(b_pad8, 1)[:B]
    # TODO(synk): if a sweep shows exposed DMA waits on v7x, add
    # pipeline_mode=pl.Buffered(3) to the activation BlockSpec.


if __name__ == "__main__":
    key = jax.random.PRNGKey(0)
    kx, kw, kb, kx2, kx3 = jax.random.split(key, 5)

    B, OUT = 8, 1

    # nn.Linear default init: U(-1/sqrt(fan_in), 1/sqrt(fan_in)).
    bound = 1.0 / (F ** 0.5)
    w = jax.random.uniform(kw, (OUT, F), jnp.float32, -bound, bound)  # PyTorch layout
    b = jax.random.uniform(kb, (OUT,), jnp.float32, -bound, bound)

    # Small demo batch (matches the module's Linear(16, 1) forward).
    x = jax.random.normal(kx, (B, F), jnp.float32)
    out = jax.block_until_ready(synthesizer_forward(x, w, b))
    ref = jax.nn.sigmoid(x @ w.T + b[None, :])
    assert out.shape == (B, OUT)
    assert jnp.allclose(out, ref, atol=1e-5, rtol=1e-5)

    # Ragged batch (pad <=7 rows) + multi-step cdiv grid with a partial tile.
    B2 = 2500
    x2 = jax.random.normal(kx2, (B2, F), jnp.float32)
    out2 = jax.block_until_ready(synthesizer_forward(x2, w, b, block_rows=1024))
    ref2 = jax.nn.sigmoid(x2 @ w.T + b[None, :])
    assert out2.shape == (B2, OUT)
    assert jnp.allclose(out2, ref2, atol=1e-5, rtol=1e-5)

    # Batch that fits one tile but is split into 2 grid steps (megacore path).
    B3 = 4096
    x3 = jax.random.normal(kx3, (B3, F), jnp.float32)
    out3 = jax.block_until_ready(synthesizer_forward(x3, w, b))
    ref3 = jax.nn.sigmoid(x3 @ w.T + b[None, :])
    assert out3.shape == (B3, OUT)
    assert jnp.allclose(out3, ref3, atol=1e-5, rtol=1e-5)

    print("KERNEL_OK")
</pallas_src>

<mosaic_0001>
module attributes {stable_mosaic.version = 11 : i64} {
  func.func @_synth_kernel(%arg0: i32, %arg1: memref<1x128xf32, #tpu.memory_space<vmem>>, %arg2: memref<128x8xf32, #tpu.memory_space<vmem>>, %arg3: memref<1xf32, #tpu.memory_space<smem>>, %arg4: memref<1x8xf32, #tpu.memory_space<vmem>>) attributes {dimension_semantics = [#tpu.dimension_semantics<parallel>], iteration_bounds = array<i64: 1>, scalar_prefetch = 0 : i64, scratch_operands = 0 : i64, tpu.core_type = #tpu.core_type<tc>, window_params = [{transform_indices = @transform_0, window_bounds = array<i64: 1, 128>}, {pipeline_mode = #tpu.pipeline_mode<synchronous>, transform_indices = @transform_1, window_bounds = array<i64: 128, 8>}, {transform_indices = @transform_2, window_bounds = array<i64: 1>}, {transform_indices = @transform_3, window_bounds = array<i64: 1, 8>}]} {
    %c0 = arith.constant 0 : index
    %c0_0 = arith.constant 0 : index
    %0 = vector.load %arg1[%c0, %c0_0] : memref<1x128xf32, #tpu.memory_space<vmem>>, vector<1x128xf32>
    %c0_1 = arith.constant 0 : index
    %c0_2 = arith.constant 0 : index
    %1 = vector.load %arg2[%c0_1, %c0_2] : memref<128x8xf32, #tpu.memory_space<vmem>>, vector<128x8xf32>
    %cst = arith.constant dense<0.000000e+00> : vector<1x8xf32>
    %2 = tpu.matmul %0, %1, %cst {dimension_numbers = #tpu.dot_dimension_numbers<[1], [0], [0], [1], [0, 0, 1, 1], [], []>} : vector<1x128xf32>, vector<128x8xf32>, vector<1x8xf32> -> vector<1x8xf32>
    %c0_3 = arith.constant 0 : index
    %3 = memref.load %arg3[%c0_3] : memref<1xf32, #tpu.memory_space<smem>>
    %4 = vector.broadcast %3 : f32 to vector<1x8xf32>
    %5 = arith.addf %2, %4 : vector<1x8xf32>
    %6 = arith.negf %5 : vector<1x8xf32>
    %7 = math.exp %6 : vector<1x8xf32>
    %cst_4 = arith.constant 1.000000e+00 : f32
    %8 = vector.broadcast %cst_4 : f32 to vector<1x8xf32>
    %9 = arith.addf %8, %7 : vector<1x8xf32>
    %10 = arith.divf %8, %9 : vector<1x8xf32>
    %c0_5 = arith.constant 0 : index
    %c0_6 = arith.constant 0 : index
    %11 = vector.load %arg4[%c0_5, %c0_6] : memref<1x8xf32, #tpu.memory_space<vmem>>, vector<1x8xf32>
    tpu.vector_store %arg4[%c0_5, %c0_6], %10 {strides = array<i32>} : memref<1x8xf32, #tpu.memory_space<vmem>>, vector<1x8xf32>,
    return
  }
  func.func @transform_0(%arg0: i32) -> (i32, i32) {
    %c0_i32 = arith.constant 0 : i32
    %c0_i32_0 = arith.constant 0 : i32
    return %arg0, %c0_i32 : i32, i32
  }
  func.func @transform_1(%arg0: i32) -> (i32, i32) {
    %c0_i32 = arith.constant 0 : i32
    %c0_i32_0 = arith.constant 0 : i32
    %c0_i32_1 = arith.constant 0 : i32
    return %c0_i32, %c0_i32_0 : i32, i32
  }
  func.func @transform_2(%arg0: i32) -> i32 {
    %c0_i32 = arith.constant 0 : i32
    %c0_i32_0 = arith.constant 0 : i32
    return %c0_i32 : i32
  }
  func.func @transform_3(%arg0: i32) -> (i32, i32) {
    %c0_i32 = arith.constant 0 : i32
    %c0_i32_0 = arith.constant 0 : i32
    return %arg0, %c0_i32 : i32, i32
  }
}

</mosaic_0001>

<bundles_post_ra>
// kernel: synthesizer_forward.1
= control target key start
LH: loop header
LB: loop body
LE: loop exit
PB: predicated region body
PF: predicated region fallthrough
CT: control target
= control target key end

     0   :  { %s202_s0 = inlined_call_operand.vmem [shape: f32[1,128], index: 0, kind: input, shape index: {}]   ;;  %s203_s1 = inlined_call_operand.vmem [shape: f32[128,8], index: 1, kind: input, shape index: {}]   ;;  %s204_s2 = inlined_call_operand.<no memory space> [shape: f32[1], index: 2, kind: input, shape index: {}]   ;;  %s205_s3 = inlined_call_operand.hbm [shape: f32[1,8], index: 3, kind: output, shape index: {}]  }
   0x1   :  { %v32_v0 = vld [vmem:[%s203_s1 + $0x78] sm:$0xff]  ;;  %v31_v1 = vld [vmem:[%s203_s1 + $0x70] sm:$0xff]  ;;  %v30_v2 = vld [vmem:[%s203_s1 + $0x68] sm:$0xff] }
   0x2   :  { %35 = vmatpush.msra.mxu0 %v32_v0  ;;  %v29_v3 = vld [vmem:[%s203_s1 + $0x60] sm:$0xff] }
   0x4   :  { %36 = vmatpush.msra.mxu0 %v31_v1 }
   0x6   :  { %37 = vmatpush.msra.mxu0 %v30_v2 }
   0x7   :  { %9 = vsyncpa [#allocation4], 0  ;;  %v28_v4 = vld [vmem:[%s203_s1 + $0x58] sm:$0xff]  ;;  %v27_v5 = vld [vmem:[%s203_s1 + $0x50] sm:$0xff]  ;;  %v34_v17 = vstv %s204_s2  ;;  %s83_s2 = sshll.u32 %s205_s3, 4  ;;  %vm74_vm3 = vcmask 57344   ;;  %s84_s2 = int_to_ptr.hbm [resolvable:$true] %s83_s2 }
   0x8   :  { %38 = vmatpush.msra.mxu0 %v29_v3  ;;  %v26_v6 = vld [vmem:[%s203_s1 + $0x48] sm:$0xff]  ;;  %v25_v7 = vld [vmem:[%s203_s1 + $0x40] sm:$0xff]  ;;  %v24_v8 = vld [vmem:[%s203_s1 + $0x38] sm:$0xff] }
   0x9   :  { %v23_v9 = vld [vmem:[%s203_s1 + $0x30] sm:$0xff]  ;;  %v22_v10 = vld [vmem:[%s203_s1 + $0x28] sm:$0xff]  ;;  %v21_v11 = vld [vmem:[%s203_s1 + $0x20] sm:$0xff] }
   0xa   :  { %39 = vmatpush.msra.mxu0 %v28_v4  ;;  %v20_v12 = vld [vmem:[%s203_s1 + $0x18] sm:$0xff]  ;;  %v19_v13 = vld [vmem:[%s203_s1 + $0x10] sm:$0xff]  ;;  %v18_v14 = vld [vmem:[%s203_s1 + $0x8] sm:$0xff] }
   0xb   :  { %v17_v15 = vld [vmem:[%s203_s1] sm:$0xff] }
   0xc   :  { %40 = vmatpush.msra.mxu0 %v27_v5  ;;  %v16_v16 = vld [vmem:[%s202_s0] sm:$0x1]  ;;  %s124_s0 = smov [#allocation3]  }
   0xd   :  { %s81_s1 = sshll.u32 %s124_s0, 4  ;;  %s82_s1 = int_to_ptr.vmem [resolvable:$true] %s81_s1 }
   0xe   :  { %41 = vmatpush.msra.mxu0 %v26_v6 }
  0x10   :  { %42 = vmatpush.msra.mxu0 %v25_v7 }
  0x12   :  { %43 = vmatpush.msra.mxu0 %v24_v8 }
  0x14   :  { %44 = vmatpush.msra.mxu0 %v23_v9 }
  0x16   :  { %45 = vmatpush.msra.mxu0 %v22_v10 }
  0x18   :  { %46 = vmatpush.msra.mxu0 %v21_v11 }
  0x1a   :  { %47 = vmatpush.msra.mxu0 %v20_v12 }
  0x1c   :  { %48 = vmatpush.msra.mxu0 %v19_v13 }
  0x1e   :  { %49 = vmatpush.msra.mxu0 %v18_v14 }
  0x20   :  { %50 = vmatpush.msra.mxu0 %v17_v15 }
  0x21   :  { %51 = vmatmul.f32.vlgmr.msra.gmra.mxu0 %v16_v16 }
  0x9e   :  { %v52_v18 = vpop.f32.mrf.mxu0 }
  0x9f   :  { %v53_v19 = vadd.f32 %v52_v18, %v34_v17 }
  0xa1   :  { %v92_v20 = vmul.f32 -1.442695, %v53_v19 }
  0xa3   :  { %94 = vpow2.f32 %v92_v20 }
  0xa9   :  { %v95_v21 = vpop.eup %94 }
  0xaa   :  { %v58_v22 = vadd.f32 1.0, %v95_v21 }
  0xac   :  { %96 = vrcp.f32 %v58_v22  ;;  %v70_v26 = vand.u32 2147483648, %v58_v22  ;;  %v68_v28 = vand.u32 2147483647, %v58_v22  ;;  %vm64_vm1 = vweird.f32 %v58_v22 }
  0xae   :  { %v71_v30 = vor.u32 1.1754944e-38, %v70_v26  ;;  %vm69_vm4 = vcmp.eq.f32.partialorder %v68_v28, 8.507059e+37 }
  0xb2   :  { %v97_v23 = vpop.eup %96 }
  0xb3   :  { %v60_v24 = vmul.f32 %v97_v23, %v58_v22  ;;  %vm65_vm0 = vweird.f32 %v97_v23 }
  0xb4   :  { %vm66_vm2 = vmor %vm64_vm1, %vm65_vm0 }
  0xb5   :  { %v61_v25 = vsub.f32 1.0, %v60_v24 }
  0xb7   :  { %v62_v27 = vmul.f32 %v97_v23, %v61_v25 }
  0xb9   :  { %v63_v29 = vadd.f32 %v97_v23, %v62_v27 }
  0xbb   :  { %v67_v31 = vsel %vm66_vm2, %v97_v23, %v63_v29 }
  0xbc   :  { %v72_v32 = vsel %vm69_vm4, %v71_v30, %v67_v31 }
  0xbd   :  { %75 = vst.msk [vmem:[#allocation3] sm:$0x1] %vm74_vm3, %v72_v32 }
  0xbe   :  { %86 = dma.vmem_to_hbm [thread:$0]  %s82_s1, 16, %s84_s2, [#allocation4]  }
  0xbf   :  { %122 = dma.done.wait [#allocation4], 16  }
  0xc0   :  { %123 = vsyncadd [#allocation4], 4294967280 }
  0xc1   :  { %91 = vsyncpa [#allocation4], 1 }

</bundles_post_ra>
